<compile_context>
chip_gen: v6e
topology: v6e:2x2x1
jax: 0.10.0
libtpu: 0.0.40
codegen_flags: <defaults>
</compile_context>

<pallas_src>
import jax
import jax.numpy as jnp
import numpy as np
from jax.experimental import pallas as pl
from jax.experimental.pallas import tpu as pltpu


# ---------------------------------------------------------------------------
# Fused Pallas kernel: three shared-weight IGConv layers in one invocation.
# ---------------------------------------------------------------------------
def igcnet10_kernel(
    x0_ref,       # [N, 3]   node features (cols 0,1 are static; col 2 dynamic)
    ea_ref,       # [E, 2]   edge attrs, dst-sorted & degree-padded
    src_oh_ref,   # [E, N]   one-hot of src node per (padded) edge slot
    valid_ref,    # [E, 1]   1.0 for real edges, 0.0 for padding slots
    w1x2_ref,     # [2, 16]  mlp1 layer1, static x_j columns
    w1p_ref,      # [1, 16]  mlp1 layer1, dynamic x_j column
    w1e_ref,      # [2, 16]  mlp1 layer1, edge_attr columns
    b1_ref,       # [1, 16]
    w2_ref,       # [16, 32] mlp1 layer2
    b2_ref,       # [1, 32]
    w3x2_ref,     # [2, 16]  mlp2 layer1, static x columns
    w3p_ref,      # [1, 16]  mlp2 layer1, dynamic x column
    w3a_ref,      # [32, 16] mlp2 layer1, aggr columns
    b3_ref,       # [1, 16]
    w4_ref,       # [16, 1]  mlp2 layer2 (sigmoid head)
    b4_ref,       # [1, 1]
    out_ref,      # [N, 3]
):
    n = x0_ref.shape[0]
    e = ea_ref.shape[0]
    d = e // n                                   # uniform (padded) in-degree

    def dot(a, b):
        return jnp.dot(a, b, preferred_element_type=jnp.float32)

    x0 = x0_ref[...]
    xs = x0[:, 0:2]                              # static columns (never change)
    p = x0[:, 2:3]                               # dynamic column, [N, 1]
    # TODO(synk): the residual [E,N] one-hot is only used to gather ONE scalar
    # per edge per layer; a dynamic lane-gather (take_along_axis) or a
    # scalar-prefetch Element gather would remove the O(E*N) term for large N,
    # but the exact one-hot matvec is used here for guaranteed Mosaic lowering.
    src_oh = src_oh_ref[...]                     # [E, N]
    valid = valid_ref[...]                       # [E, 1]

    w1p = w1p_ref[...]
    w2, b2 = w2_ref[...], b2_ref[...]
    w3p = w3p_ref[...]
    w3a = w3a_ref[...]
    w4, b4 = w4_ref[...], b4_ref[...]

    # Layer-invariant terms, hoisted out of the 3-layer loop.
    #   c_e  : static-x_j + edge_attr + bias contribution of mlp1 layer 1, [E,16]
    #   t_pre: static-x + bias contribution of mlp2 layer 1,               [N,16]
    c_e = (dot(src_oh, dot(xs, w1x2_ref[...]))
           + dot(ea_ref[...], w1e_ref[...]) + b1_ref[...])
    t_pre = dot(xs, w3x2_ref[...]) + b3_ref[...]

    for _ in range(3):                           # shared-weight IGConv applied 3x
        # message(): relu(mlp1_l1(cat[x_j, edge_attr])).  The gather of the
        # dynamic node scalar is fused into a single matmul: src_oh @ (p * w1_p).
        h = jnp.maximum(c_e + dot(src_oh, p * w1p), 0.0)            # [E, 16]
        msg = jnp.maximum(dot(h, w2) + b2, 0.0)                     # [E, 32]

        # aggregate: per-dst max over incoming edges.  Edges are dst-sorted and
        # padded to degree d; msg >= 0 after relu, so zeroing padded slots
        # reproduces PyG's zero fill for empty segments (requires the relu!).
        msg = msg * valid
        aggr = jnp.max(msg.reshape(n, d, msg.shape[-1]), axis=1)    # [N, 32]

        # update(): comb = mlp2(cat[x, aggr]); only column 2 of x changes.
        t = jnp.maximum(t_pre + p * w3p + dot(aggr, w3a), 0.0)      # [N, 16]
        p = jax.nn.sigmoid(dot(t, w4) + b4)                         # [N, 1]

    # out = cat([x[:, :2], comb]); iota/where mask emitted once (not per layer).
    col = jax.lax.broadcasted_iota(jnp.int32, out_ref.shape, 1)
    out_ref[...] = jnp.where(col < 2, x0, p)


def igcnet10_pallas(x0, edge_attr_pad, src_oh, valid, kparams):
    n = x0.shape[0]
    e = edge_attr_pad.shape[0]
    flops_layer = 2 * e * n * 16 + 2 * e * 16 * 32 + 2 * n * 32 * 16 + 2 * n * 16
    flops = 3 * flops_layer + 2 * e * n * 16 + 2 * e * 2 * 16 + 2 * n * 2 * 16
    inputs = (x0, edge_attr_pad, src_oh, valid) + tuple(kparams)
    bytes_accessed = int(sum(a.size * a.dtype.itemsize for a in inputs)
                         + x0.size * 4)

    vmem = pl.BlockSpec(memory_space=pltpu.MemorySpace.VMEM)
    return pl.pallas_call(
        igcnet10_kernel,
        out_shape=jax.ShapeDtypeStruct(x0.shape, jnp.float32),
        in_specs=[vmem] * len(inputs),
        out_specs=vmem,
        compiler_params=pltpu.CompilerParams(vmem_limit_bytes=32 * 1024 * 1024),
        cost_estimate=pl.CostEstimate(flops=int(flops),
                                      transcendentals=int(3 * n),
                                      bytes_accessed=bytes_accessed),
    )(*inputs)


# ---------------------------------------------------------------------------
# Host-side graph preprocessing (structure only, done once per graph).
# ---------------------------------------------------------------------------
def build_graph_structure(src, dst, edge_attr, num_nodes):
    """Sort edges by dst and pad each node's incoming edge list to a uniform
    degree (multiple of 8) so in-kernel max-aggregation is a reshape + max."""
    src = np.asarray(src, dtype=np.int64)
    dst = np.asarray(dst, dtype=np.int64)
    edge_attr = np.asarray(edge_attr, dtype=np.float32)
    e = src.shape[0]

    order = np.argsort(dst, kind="stable")
    deg = np.bincount(dst, minlength=num_nodes)
    d_max = int(deg.max()) if e > 0 else 1
    d_pad = max(8, -(-d_max // 8) * 8)           # round up to multiple of 8
    e_pad = num_nodes * d_pad

    sorted_dst = dst[order]
    slot = np.arange(e) - np.searchsorted(sorted_dst, sorted_dst, side="left")
    rows = sorted_dst * d_pad + slot

    ea_pad = np.zeros((e_pad, edge_attr.shape[1]), np.float32)
    src_oh = np.zeros((e_pad, num_nodes), np.float32)
    valid = np.zeros((e_pad, 1), np.float32)
    ea_pad[rows] = edge_attr[order]
    src_oh[rows, src[order]] = 1.0               # padded slots stay all-zero
    valid[rows, 0] = 1.0
    return jnp.asarray(ea_pad), jnp.asarray(src_oh), jnp.asarray(valid)


# ---------------------------------------------------------------------------
# Parameters (shapes from IGCNet10.__init__: mlp1=[5,16,32], mlp2=[35,16]+Lin(16,1))
# ---------------------------------------------------------------------------
def init_params(key):
    def lin(k, fan_in, fan_out):
        scale = 1.0 / np.sqrt(fan_in)
        kw, kb = jax.random.split(k)
        w = jax.random.uniform(kw, (fan_in, fan_out), jnp.float32, -scale, scale)
        b = jax.random.uniform(kb, (1, fan_out), jnp.float32, -scale, scale)
        return w, b

    ks = jax.random.split(key, 4)
    w1, b1 = lin(ks[0], 5, 16)     # mlp1 layer 1: in = cat([x_j(3), edge_attr(2)])
    w2, b2 = lin(ks[1], 16, 32)    # mlp1 layer 2
    w3, b3 = lin(ks[2], 35, 16)    # mlp2 layer 1: in = cat([x(3), aggr(32)])
    w4, b4 = lin(ks[3], 16, 1)     # mlp2 layer 2 (sigmoid head)
    return {"w1": w1, "b1": b1, "w2": w2, "b2": b2,
            "w3": w3, "b3": b3, "w4": w4, "b4": b4}


def kernel_params(p):
    """Split concat-weight matrices along their input blocks:
    cat([a, b]) @ W == a @ W_a + b @ W_b (no in-kernel lane concatenation)."""
    w1, w3 = p["w1"], p["w3"]
    return (w1[0:2], w1[2:3], w1[3:5], p["b1"],
            p["w2"], p["b2"],
            w3[0:2], w3[2:3], w3[3:35], p["b3"],
            p["w4"], p["b4"])


# ---------------------------------------------------------------------------
# Pure-JAX reference (mirrors the PyTorch/PyG semantics) for a sanity check.
# ---------------------------------------------------------------------------
def igconv_ref(x, edge_attr, src, dst, params, num_nodes):
    tmp = jnp.concatenate([x[src], edge_attr], axis=1)            # [E, 5]
    h = jax.nn.relu(tmp @ params["w1"] + params["b1"])
    msg = jax.nn.relu(h @ params["w2"] + params["b2"])            # [E, 32]
    aggr = jax.ops.segment_max(msg, dst, num_segments=num_nodes)
    aggr = jnp.maximum(aggr, 0.0)                                 # empty-segment fill
    tmp2 = jnp.concatenate([x, aggr], axis=1)                     # [N, 35]
    t = jax.nn.relu(tmp2 @ params["w3"] + params["b3"])
    comb = jax.nn.sigmoid(t @ params["w4"] + params["b4"])        # [N, 1]
    return jnp.concatenate([x[:, :2], comb], axis=1)


def igcnet10_ref(x0, edge_attr, src, dst, params, num_nodes):
    x1 = igconv_ref(x0, edge_attr, src, dst, params, num_nodes)
    x2 = igconv_ref(x1, edge_attr, src, dst, params, num_nodes)
    return igconv_ref(x2, edge_attr, src, dst, params, num_nodes)


if __name__ == "__main__":
    key = jax.random.PRNGKey(0)
    k_params, k_x, k_ea = jax.random.split(key, 3)

    # Small synthetic graph: N nodes, complete directed graph with self loops
    # (the typical IGCNet interference graph).
    N = 8
    src_np = np.repeat(np.arange(N), N)          # [E]
    dst_np = np.tile(np.arange(N), N)            # [E]
    E = src_np.shape[0]                          # 64

    x0 = jax.random.uniform(k_x, (N, 3), jnp.float32)
    edge_attr = jax.random.uniform(k_ea, (E, 2), jnp.float32)

    params = init_params(k_params)
    kparams = kernel_params(params)
    ea_pad, src_oh, valid = build_graph_structure(src_np, dst_np,
                                                  np.asarray(edge_attr), N)

    fwd = jax.jit(igcnet10_pallas)
    out = jax.block_until_ready(fwd(x0, ea_pad, src_oh, valid, kparams))

    ref = igcnet10_ref(x0, edge_attr, jnp.asarray(src_np), jnp.asarray(dst_np),
                       params, N)
    np.testing.assert_allclose(np.asarray(out), np.asarray(ref),
                               rtol=1e-5, atol=1e-5)

    print("KERNEL_OK")
</pallas_src>

<mosaic_0001>
module attributes {stable_mosaic.version = 11 : i64} {
  func.func @igcnet10_kernel(%arg0: memref<8x3xf32, #tpu.memory_space<vmem>>, %arg1: memref<64x2xf32, #tpu.memory_space<vmem>>, %arg2: memref<64x8xf32, #tpu.memory_space<vmem>>, %arg3: memref<64x1xf32, #tpu.memory_space<vmem>>, %arg4: memref<2x16xf32, #tpu.memory_space<vmem>>, %arg5: memref<1x16xf32, #tpu.memory_space<vmem>>, %arg6: memref<2x16xf32, #tpu.memory_space<vmem>>, %arg7: memref<1x16xf32, #tpu.memory_space<vmem>>, %arg8: memref<16x32xf32, #tpu.memory_space<vmem>>, %arg9: memref<1x32xf32, #tpu.memory_space<vmem>>, %arg10: memref<2x16xf32, #tpu.memory_space<vmem>>, %arg11: memref<1x16xf32, #tpu.memory_space<vmem>>, %arg12: memref<32x16xf32, #tpu.memory_space<vmem>>, %arg13: memref<1x16xf32, #tpu.memory_space<vmem>>, %arg14: memref<16x1xf32, #tpu.memory_space<vmem>>, %arg15: memref<1x1xf32, #tpu.memory_space<vmem>>, %arg16: memref<8x3xf32, #tpu.memory_space<vmem>>) attributes {dimension_semantics = [], scalar_prefetch = 0 : i64, scratch_operands = 0 : i64, tpu.core_type = #tpu.core_type<tc>} {
    %c0 = arith.constant 0 : index
    %c0_0 = arith.constant 0 : index
    %0 = vector.load %arg0[%c0, %c0_0] : memref<8x3xf32, #tpu.memory_space<vmem>>, vector<8x3xf32>
    %1 = vector.extract_strided_slice %0 {offsets = [0, 0], sizes = [8, 2], strides = [1, 1]} : vector<8x3xf32> to vector<8x2xf32>
    %2 = vector.extract_strided_slice %0 {offsets = [0, 2], sizes = [8, 1], strides = [1, 1]} : vector<8x3xf32> to vector<8x1xf32>
    %c0_1 = arith.constant 0 : index
    %c0_2 = arith.constant 0 : index
    %3 = vector.load %arg2[%c0_1, %c0_2] : memref<64x8xf32, #tpu.memory_space<vmem>>, vector<64x8xf32>
    %c0_3 = arith.constant 0 : index
    %c0_4 = arith.constant 0 : index
    %4 = vector.load %arg3[%c0_3, %c0_4] : memref<64x1xf32, #tpu.memory_space<vmem>>, vector<64x1xf32>
    %c0_5 = arith.constant 0 : index
    %c0_6 = arith.constant 0 : index
    %5 = vector.load %arg5[%c0_5, %c0_6] : memref<1x16xf32, #tpu.memory_space<vmem>>, vector<1x16xf32>
    %c0_7 = arith.constant 0 : index
    %c0_8 = arith.constant 0 : index
    %6 = vector.load %arg8[%c0_7, %c0_8] : memref<16x32xf32, #tpu.memory_space<vmem>>, vector<16x32xf32>
    %c0_9 = arith.constant 0 : index
    %c0_10 = arith.constant 0 : index
    %7 = vector.load %arg9[%c0_9, %c0_10] : memref<1x32xf32, #tpu.memory_space<vmem>>, vector<1x32xf32>
    %c0_11 = arith.constant 0 : index
    %c0_12 = arith.constant 0 : index
    %8 = vector.load %arg11[%c0_11, %c0_12] : memref<1x16xf32, #tpu.memory_space<vmem>>, vector<1x16xf32>
    %c0_13 = arith.constant 0 : index
    %c0_14 = arith.constant 0 : index
    %9 = vector.load %arg12[%c0_13, %c0_14] : memref<32x16xf32, #tpu.memory_space<vmem>>, vector<32x16xf32>
    %c0_15 = arith.constant 0 : index
    %c0_16 = arith.constant 0 : index
    %10 = vector.load %arg14[%c0_15, %c0_16] : memref<16x1xf32, #tpu.memory_space<vmem>>, vector<16x1xf32>
    %c0_17 = arith.constant 0 : index
    %c0_18 = arith.constant 0 : index
    %11 = vector.load %arg15[%c0_17, %c0_18] : memref<1x1xf32, #tpu.memory_space<vmem>>, vector<1x1xf32>
    %c0_19 = arith.constant 0 : index
    %c0_20 = arith.constant 0 : index
    %12 = vector.load %arg4[%c0_19, %c0_20] : memref<2x16xf32, #tpu.memory_space<vmem>>, vector<2x16xf32>
    %cst = arith.constant dense<0.000000e+00> : vector<8x16xf32>
    %13 = tpu.matmul %1, %12, %cst {dimension_numbers = #tpu.dot_dimension_numbers<[1], [0], [0], [1], [0, 0, 1, 1], [], []>} : vector<8x2xf32>, vector<2x16xf32>, vector<8x16xf32> -> vector<8x16xf32>
    %cst_21 = arith.constant dense<0.000000e+00> : vector<64x16xf32>
    %14 = tpu.matmul %3, %13, %cst_21 {dimension_numbers = #tpu.dot_dimension_numbers<[1], [0], [0], [1], [0, 0, 1, 1], [], []>} : vector<64x8xf32>, vector<8x16xf32>, vector<64x16xf32> -> vector<64x16xf32>
    %c0_22 = arith.constant 0 : index
    %c0_23 = arith.constant 0 : index
    %15 = vector.load %arg1[%c0_22, %c0_23] : memref<64x2xf32, #tpu.memory_space<vmem>>, vector<64x2xf32>
    %c0_24 = arith.constant 0 : index
    %c0_25 = arith.constant 0 : index
    %16 = vector.load %arg6[%c0_24, %c0_25] : memref<2x16xf32, #tpu.memory_space<vmem>>, vector<2x16xf32>
    %cst_26 = arith.constant dense<0.000000e+00> : vector<64x16xf32>
    %17 = tpu.matmul %15, %16, %cst_26 {dimension_numbers = #tpu.dot_dimension_numbers<[1], [0], [0], [1], [0, 0, 1, 1], [], []>} : vector<64x2xf32>, vector<2x16xf32>, vector<64x16xf32> -> vector<64x16xf32>
    %18 = arith.addf %14, %17 : vector<64x16xf32>
    %c0_27 = arith.constant 0 : index
    %c0_28 = arith.constant 0 : index
    %19 = vector.load %arg7[%c0_27, %c0_28] : memref<1x16xf32, #tpu.memory_space<vmem>>, vector<1x16xf32>
    %20 = vector.broadcast %19 : vector<1x16xf32> to vector<64x16xf32>
    %21 = arith.addf %18, %20 : vector<64x16xf32>
    %c0_29 = arith.constant 0 : index
    %c0_30 = arith.constant 0 : index
    %22 = vector.load %arg10[%c0_29, %c0_30] : memref<2x16xf32, #tpu.memory_space<vmem>>, vector<2x16xf32>
    %cst_31 = arith.constant dense<0.000000e+00> : vector<8x16xf32>
    %23 = tpu.matmul %1, %22, %cst_31 {dimension_numbers = #tpu.dot_dimension_numbers<[1], [0], [0], [1], [0, 0, 1, 1], [], []>} : vector<8x2xf32>, vector<2x16xf32>, vector<8x16xf32> -> vector<8x16xf32>
    %c0_32 = arith.constant 0 : index
    %c0_33 = arith.constant 0 : index
    %24 = vector.load %arg13[%c0_32, %c0_33] : memref<1x16xf32, #tpu.memory_space<vmem>>, vector<1x16xf32>
    %25 = vector.broadcast %24 : vector<1x16xf32> to vector<8x16xf32>
    %26 = arith.addf %23, %25 : vector<8x16xf32>
    %27 = vector.broadcast %2 : vector<8x1xf32> to vector<8x16xf32>
    %28 = vector.broadcast %5 : vector<1x16xf32> to vector<8x16xf32>
    %29 = arith.mulf %27, %28 : vector<8x16xf32>
    %cst_34 = arith.constant dense<0.000000e+00> : vector<64x16xf32>
    %30 = tpu.matmul %3, %29, %cst_34 {dimension_numbers = #tpu.dot_dimension_numbers<[1], [0], [0], [1], [0, 0, 1, 1], [], []>} : vector<64x8xf32>, vector<8x16xf32>, vector<64x16xf32> -> vector<64x16xf32>
    %31 = arith.addf %21, %30 : vector<64x16xf32>
    %cst_35 = arith.constant 0.000000e+00 : f32
    %32 = vector.broadcast %cst_35 : f32 to vector<64x16xf32>
    %33 = arith.maximumf %31, %32 : vector<64x16xf32>
    %cst_36 = arith.constant dense<0.000000e+00> : vector<64x32xf32>
    %34 = tpu.matmul %33, %6, %cst_36 {dimension_numbers = #tpu.dot_dimension_numbers<[1], [0], [0], [1], [0, 0, 1, 1], [], []>} : vector<64x16xf32>, vector<16x32xf32>, vector<64x32xf32> -> vector<64x32xf32>
    %35 = vector.broadcast %7 : vector<1x32xf32> to vector<64x32xf32>
    %36 = arith.addf %34, %35 : vector<64x32xf32>
    %cst_37 = arith.constant 0.000000e+00 : f32
    %37 = vector.broadcast %cst_37 : f32 to vector<64x32xf32>
    %38 = arith.maximumf %36, %37 : vector<64x32xf32>
    %39 = vector.broadcast %4 : vector<64x1xf32> to vector<64x32xf32>
    %40 = arith.mulf %38, %39 : vector<64x32xf32>
    %41 = vector.shape_cast %40 : vector<64x32xf32> to vector<8x8x32xf32>
    %cst_38 = arith.constant dense<0xFF800000> : vector<8x32xf32>
    %42 = vector.multi_reduction <maximumf>, %41, %cst_38 [1] : vector<8x8x32xf32> to vector<8x32xf32>
    %43 = vector.broadcast %2 : vector<8x1xf32> to vector<8x16xf32>
    %44 = vector.broadcast %8 : vector<1x16xf32> to vector<8x16xf32>
    %45 = arith.mulf %43, %44 : vector<8x16xf32>
    %46 = arith.addf %26, %45 : vector<8x16xf32>
    %cst_39 = arith.constant dense<0.000000e+00> : vector<8x16xf32>
    %47 = tpu.matmul %42, %9, %cst_39 {dimension_numbers = #tpu.dot_dimension_numbers<[1], [0], [0], [1], [0, 0, 1, 1], [], []>} : vector<8x32xf32>, vector<32x16xf32>, vector<8x16xf32> -> vector<8x16xf32>
    %48 = arith.addf %46, %47 : vector<8x16xf32>
    %cst_40 = arith.constant 0.000000e+00 : f32
    %49 = vector.broadcast %cst_40 : f32 to vector<8x16xf32>
    %50 = arith.maximumf %48, %49 : vector<8x16xf32>
    %cst_41 = arith.constant dense<0.000000e+00> : vector<8x1xf32>
    %51 = tpu.matmul %50, %10, %cst_41 {dimension_numbers = #tpu.dot_dimension_numbers<[1], [0], [0], [1], [0, 0, 1, 1], [], []>} : vector<8x16xf32>, vector<16x1xf32>, vector<8x1xf32> -> vector<8x1xf32>
    %52 = vector.broadcast %11 : vector<1x1xf32> to vector<8x1xf32>
    %53 = arith.addf %51, %52 : vector<8x1xf32>
    %54 = arith.negf %53 : vector<8x1xf32>
    %55 = math.exp %54 : vector<8x1xf32>
    %cst_42 = arith.constant 1.000000e+00 : f32
    %56 = vector.broadcast %cst_42 : f32 to vector<8x1xf32>
    %57 = arith.addf %56, %55 : vector<8x1xf32>
    %58 = arith.divf %56, %57 : vector<8x1xf32>
    %59 = vector.broadcast %58 : vector<8x1xf32> to vector<8x16xf32>
    %60 = vector.broadcast %5 : vector<1x16xf32> to vector<8x16xf32>
    %61 = arith.mulf %59, %60 : vector<8x16xf32>
    %cst_43 = arith.constant dense<0.000000e+00> : vector<64x16xf32>
    %62 = tpu.matmul %3, %61, %cst_43 {dimension_numbers = #tpu.dot_dimension_numbers<[1], [0], [0], [1], [0, 0, 1, 1], [], []>} : vector<64x8xf32>, vector<8x16xf32>, vector<64x16xf32> -> vector<64x16xf32>
    %63 = arith.addf %21, %62 : vector<64x16xf32>
    %cst_44 = arith.constant 0.000000e+00 : f32
    %64 = vector.broadcast %cst_44 : f32 to vector<64x16xf32>
    %65 = arith.maximumf %63, %64 : vector<64x16xf32>
    %cst_45 = arith.constant dense<0.000000e+00> : vector<64x32xf32>
    %66 = tpu.matmul %65, %6, %cst_45 {dimension_numbers = #tpu.dot_dimension_numbers<[1], [0], [0], [1], [0, 0, 1, 1], [], []>} : vector<64x16xf32>, vector<16x32xf32>, vector<64x32xf32> -> vector<64x32xf32>
    %67 = vector.broadcast %7 : vector<1x32xf32> to vector<64x32xf32>
    %68 = arith.addf %66, %67 : vector<64x32xf32>
    %cst_46 = arith.constant 0.000000e+00 : f32
    %69 = vector.broadcast %cst_46 : f32 to vector<64x32xf32>
    %70 = arith.maximumf %68, %69 : vector<64x32xf32>
    %71 = vector.broadcast %4 : vector<64x1xf32> to vector<64x32xf32>
    %72 = arith.mulf %70, %71 : vector<64x32xf32>
    %73 = vector.shape_cast %72 : vector<64x32xf32> to vector<8x8x32xf32>
    %cst_47 = arith.constant dense<0xFF800000> : vector<8x32xf32>
    %74 = vector.multi_reduction <maximumf>, %73, %cst_47 [1] : vector<8x8x32xf32> to vector<8x32xf32>
    %75 = vector.broadcast %58 : vector<8x1xf32> to vector<8x16xf32>
    %76 = vector.broadcast %8 : vector<1x16xf32> to vector<8x16xf32>
    %77 = arith.mulf %75, %76 : vector<8x16xf32>
    %78 = arith.addf %26, %77 : vector<8x16xf32>
    %cst_48 = arith.constant dense<0.000000e+00> : vector<8x16xf32>
    %79 = tpu.matmul %74, %9, %cst_48 {dimension_numbers = #tpu.dot_dimension_numbers<[1], [0], [0], [1], [0, 0, 1, 1], [], []>} : vector<8x32xf32>, vector<32x16xf32>, vector<8x16xf32> -> vector<8x16xf32>
    %80 = arith.addf %78, %79 : vector<8x16xf32>
    %cst_49 = arith.constant 0.000000e+00 : f32
    %81 = vector.broadcast %cst_49 : f32 to vector<8x16xf32>
    %82 = arith.maximumf %80, %81 : vector<8x16xf32>
    %cst_50 = arith.constant dense<0.000000e+00> : vector<8x1xf32>
    %83 = tpu.matmul %82, %10, %cst_50 {dimension_numbers = #tpu.dot_dimension_numbers<[1], [0], [0], [1], [0, 0, 1, 1], [], []>} : vector<8x16xf32>, vector<16x1xf32>, vector<8x1xf32> -> vector<8x1xf32>
    %84 = vector.broadcast %11 : vector<1x1xf32> to vector<8x1xf32>
    %85 = arith.addf %83, %84 : vector<8x1xf32>
    %86 = arith.negf %85 : vector<8x1xf32>
    %87 = math.exp %86 : vector<8x1xf32>
    %cst_51 = arith.constant 1.000000e+00 : f32
    %88 = vector.broadcast %cst_51 : f32 to vector<8x1xf32>
    %89 = arith.addf %88, %87 : vector<8x1xf32>
    %90 = arith.divf %88, %89 : vector<8x1xf32>
    %91 = vector.broadcast %90 : vector<8x1xf32> to vector<8x16xf32>
    %92 = vector.broadcast %5 : vector<1x16xf32> to vector<8x16xf32>
    %93 = arith.mulf %91, %92 : vector<8x16xf32>
    %cst_52 = arith.constant dense<0.000000e+00> : vector<64x16xf32>
    %94 = tpu.matmul %3, %93, %cst_52 {dimension_numbers = #tpu.dot_dimension_numbers<[1], [0], [0], [1], [0, 0, 1, 1], [], []>} : vector<64x8xf32>, vector<8x16xf32>, vector<64x16xf32> -> vector<64x16xf32>
    %95 = arith.addf %21, %94 : vector<64x16xf32>
    %cst_53 = arith.constant 0.000000e+00 : f32
    %96 = vector.broadcast %cst_53 : f32 to vector<64x16xf32>
    %97 = arith.maximumf %95, %96 : vector<64x16xf32>
    %cst_54 = arith.constant dense<0.000000e+00> : vector<64x32xf32>
    %98 = tpu.matmul %97, %6, %cst_54 {dimension_numbers = #tpu.dot_dimension_numbers<[1], [0], [0], [1], [0, 0, 1, 1], [], []>} : vector<64x16xf32>, vector<16x32xf32>, vector<64x32xf32> -> vector<64x32xf32>
    %99 = vector.broadcast %7 : vector<1x32xf32> to vector<64x32xf32>
    %100 = arith.addf %98, %99 : vector<64x32xf32>
    %cst_55 = arith.constant 0.000000e+00 : f32
    %101 = vector.broadcast %cst_55 : f32 to vector<64x32xf32>
    %102 = arith.maximumf %100, %101 : vector<64x32xf32>
    %103 = vector.broadcast %4 : vector<64x1xf32> to vector<64x32xf32>
    %104 = arith.mulf %102, %103 : vector<64x32xf32>
    %105 = vector.shape_cast %104 : vector<64x32xf32> to vector<8x8x32xf32>
    %cst_56 = arith.constant dense<0xFF800000> : vector<8x32xf32>
    %106 = vector.multi_reduction <maximumf>, %105, %cst_56 [1] : vector<8x8x32xf32> to vector<8x32xf32>
    %107 = vector.broadcast %90 : vector<8x1xf32> to vector<8x16xf32>
    %108 = vector.broadcast %8 : vector<1x16xf32> to vector<8x16xf32>
    %109 = arith.mulf %107, %108 : vector<8x16xf32>
    %110 = arith.addf %26, %109 : vector<8x16xf32>
    %cst_57 = arith.constant dense<0.000000e+00> : vector<8x16xf32>
    %111 = tpu.matmul %106, %9, %cst_57 {dimension_numbers = #tpu.dot_dimension_numbers<[1], [0], [0], [1], [0, 0, 1, 1], [], []>} : vector<8x32xf32>, vector<32x16xf32>, vector<8x16xf32> -> vector<8x16xf32>
    %112 = arith.addf %110, %111 : vector<8x16xf32>
    %cst_58 = arith.constant 0.000000e+00 : f32
    %113 = vector.broadcast %cst_58 : f32 to vector<8x16xf32>
    %114 = arith.maximumf %112, %113 : vector<8x16xf32>
    %cst_59 = arith.constant dense<0.000000e+00> : vector<8x1xf32>
    %115 = tpu.matmul %114, %10, %cst_59 {dimension_numbers = #tpu.dot_dimension_numbers<[1], [0], [0], [1], [0, 0, 1, 1], [], []>} : vector<8x16xf32>, vector<16x1xf32>, vector<8x1xf32> -> vector<8x1xf32>
    %116 = vector.broadcast %11 : vector<1x1xf32> to vector<8x1xf32>
    %117 = arith.addf %115, %116 : vector<8x1xf32>
    %118 = arith.negf %117 : vector<8x1xf32>
    %119 = math.exp %118 : vector<8x1xf32>
    %cst_60 = arith.constant 1.000000e+00 : f32
    %120 = vector.broadcast %cst_60 : f32 to vector<8x1xf32>
    %121 = arith.addf %120, %119 : vector<8x1xf32>
    %122 = arith.divf %120, %121 : vector<8x1xf32>
    %123 = tpu.iota {dimensions = array<i32: 1>} : vector<8x3xi32>
    %c2_i32 = arith.constant 2 : i32
    %124 = vector.broadcast %c2_i32 : i32 to vector<8x3xi32>
    %125 = arith.cmpi slt, %123, %124 : vector<8x3xi32>
    %126 = vector.shape_cast %122 : vector<8x1xf32> to vector<8x1xf32>
    %127 = vector.broadcast %126 : vector<8x1xf32> to vector<8x3xf32>
    %128 = arith.select %125, %0, %127 : vector<8x3xi1>, vector<8x3xf32>
    %c0_61 = arith.constant 0 : index
    %c0_62 = arith.constant 0 : index
    %129 = vector.load %arg16[%c0_61, %c0_62] : memref<8x3xf32, #tpu.memory_space<vmem>>, vector<8x3xf32>
    tpu.vector_store %arg16[%c0_61, %c0_62], %128 {strides = array<i32>} : memref<8x3xf32, #tpu.memory_space<vmem>>, vector<8x3xf32>,
    return
  }
}

</mosaic_0001>

<bundles_post_ra>
// kernel: igcnet10_pallas.1
= control target key start
LH: loop header
LB: loop body
LE: loop exit
PB: predicated region body
PF: predicated region fallthrough
CT: control target
= control target key end

     0   :  { %vm89_vm0 = vcmask 1041408   ;;  %vm85_vm1 = vcmask 15360   ;;  %v3154_v0 = vmov 0.0   ;;  %vm2501_vm2 = vmmov 0   ;;  %s3137_s4 = inlined_call_operand.vmem [shape: f32[2,16], index: 4, kind: input, shape index: {}]   ;;  %s3138_s6 = inlined_call_operand.vmem [shape: f32[2,16], index: 6, kind: input, shape index: {}]   ;;  %s3139_s0 = inlined_call_operand.vmem [shape: f32[8,3], index: 0, kind: input, shape index: {}]   ;;  %s3140_s1 = inlined_call_operand.vmem [shape: f32[64,2], index: 1, kind: input, shape index: {}]   ;;  %s3141_s10 = inlined_call_operand.vmem [shape: f32[2,16], index: 10, kind: input, shape index: {}]   ;;  %s3142_s2 = inlined_call_operand.vmem [shape: f32[64,8], index: 2, kind: input, shape index: {}]   ;;  %s3143_s5 = inlined_call_operand.vmem [shape: f32[1,16], index: 5, kind: input, shape index: {}]   ;;  %s3144_s8 = inlined_call_operand.vmem [shape: f32[16,32], index: 8, kind: input, shape index: {}]   ;;  %s3145_s3 = inlined_call_operand.vmem [shape: f32[64,1], index: 3, kind: input, shape index: {}]   ;;  %s3146_s7 = inlined_call_operand.vmem [shape: f32[1,16], index: 7, kind: input, shape index: {}]   ;;  %s3147_s12 = inlined_call_operand.vmem [shape: f32[32,16], index: 12, kind: input, shape index: {}]   ;;  %s3148_s14 = inlined_call_operand.vmem [shape: f32[16,1], index: 14, kind: input, shape index: {}]   ;;  %s3149_s9 = inlined_call_operand.vmem [shape: f32[1,32], index: 9, kind: input, shape index: {}]   ;;  %s3150_s15 = inlined_call_operand.<no memory space> [shape: f32[1,1], index: 15, kind: input, shape index: {}]   ;;  %s3151_s13 = inlined_call_operand.vmem [shape: f32[1,16], index: 13, kind: input, shape index: {}]   ;;  %s3152_s11 = inlined_call_operand.vmem [shape: f32[1,16], index: 11, kind: input, shape index: {}]   ;;  %s3153_s16 = inlined_call_operand.vmem [shape: f32[8,3], index: 16, kind: output, shape index: {}]  }
   0x1   :  { %3164 = sst [smem:[#allocation10_spill]] %s3137_s4  ;;  %2298 = vmatprep.subr.mxu0 %v3154_v0  ;;  %2300 = vmatprep.mubr.msk.f32.mxu0 %vm2501_vm2, %v3154_v0  ;;  %v171_v2 = vld [vmem:[%s3138_s6] sm:$0x3]  ;;  %v164_v5 = vld [vmem:[%s3140_s1 + $0x8] sm:$0xff]  ;;  %v165_v6 = vld [vmem:[%s3140_s1 + $0x10] sm:$0xff]  ;;  %v2502_v8 = vmov 2  }
   0x2   :  { %s3165_s23 = sld [smem:[#allocation10_spill]]  ;;  %v55_v3 = vld [vmem:[%s3139_s0] sm:$0xff]  ;;  %2303 = vmatprep.subr.msk.mxu1 %vm89_vm0, %v171_v2  ;;  %2484 = vset.pattern.permute.xlu0 %v2502_v8  ;;  %v166_v9 = vld [vmem:[%s3140_s1 + $0x18] sm:$0xff]  ;;  %v168_v11 = vld [vmem:[%s3140_s1 + $0x28] sm:$0xff]  ;;  %vm304_vm3 = vcmask 64512   ;;  %v2503_v39 = vmov 0  }
   0x3   :  { %v163_v4 = vld [vmem:[%s3140_s1] sm:$0xff]  ;;  %2304 = vmatpush3.msk.msra.mxu1 %vm89_vm0, %v171_v2  ;;  %531 = vperm.xlu0 %2484, %v55_v3   ;;  %v169_v12 = vld [vmem:[%s3140_s1 + $0x30] sm:$0xff]  ;;  %v170_v13 = vld [vmem:[%s3140_s1 + $0x38] sm:$0xff]  ;;  %vm668_vm4 = vcmask 130048   ;;  %vm854_vm5 = vcmask 261120   ;;  %vm927_vm6 = vcmask 1041409  }
   0x4   :  { %2305 = vmatprep.mubr.msk.f32.mxu1 %vm85_vm1, %v163_v4  ;;  %2331 = vmatprep.subr.mxu1 %v3154_v0  ;;  %v449_v7 = vld [vmem:[%s3141_s10] sm:$0x3]  ;;  %v2664_v19 = vld [vmem:[%s3142_s2 + $0x8] sm:$0xff]  ;;  %v2669_v20 = vld [vmem:[%s3142_s2 + $0x10] sm:$0xff]  ;;  %vm929_vm7 = vcmask 1042434   ;;  %vm931_vm8 = vcmask 1043459  }
   0x5   :  { %2306 = vmatmul.mubr.msk.f32.vlgmr.msra.gmra.mxu1 %vm85_vm1, %v164_v5  ;;  %v167_v10 = vld [vmem:[%s3140_s1 + $0x20] sm:$0xff]  ;;  %v2682_v24 = vld [vmem:[%s3142_s2 + $0x18] sm:$0xff]  ;;  %v2701_v28 = vld [vmem:[%s3142_s2 + $0x28] sm:$0xff]  ;;  %2486 = vset.pattern.permute.xlu1 %v2503_v39  ;;  %vm933_vm9 = vcmask 1044484   ;;  %vm935_vm10 = vcmask 1045509   ;;  %vm937_vm11 = vcmask 1046534  }
   0x6   :  { %2308 = vmatprep.mubr.msk.f32.mxu1 %vm85_vm1, %v165_v6  ;;  %2332 = vmatpush3.msk.msra.mxu1 %vm89_vm0, %v449_v7  ;;  %v2648_v14 = vld [vmem:[%s3142_s2] sm:$0xff]  ;;  %v2706_v29 = vld [vmem:[%s3142_s2 + $0x30] sm:$0xff]  ;;  %v2719_v32 = vld [vmem:[%s3142_s2 + $0x38] sm:$0xff]  ;;  %vm939_vm12 = vcmask 1047559   ;;  %vm2105_vm14 = vcmask 23552  }
   0x7   :  { %v2655_v15 = vld [vmem:[%s3143_s5] ss:$0 sm:$0xff]  ;;  %v2750_v37 = vld [vmem:[%s3144_s8 + $0x8] sm:$0xff]  ;;  %2485 = vset.pattern.permute.xlu0 %v2503_v39  ;;  %v66_v42 = vld [vmem:[%s3145_s3 + $0x10] sm:$0xff] }
   0x8   :  { %v84_v1 = vld [vmem:[%s3165_s23] sm:$0x3]  ;;  %2350 = vmatprep.subr.mxu1 %v2750_v37  ;;  %v65_v40 = vld [vmem:[%s3145_s3 + $0x8] sm:$0xff]  ;;  %v67_v44 = vld [vmem:[%s3145_s3 + $0x18] sm:$0xff] }
   0x9   :  { %2299 = vmatpush3.msk.msra.mxu0 %vm89_vm0, %v84_v1  ;;  %2309 = vmatmul.mubr.msk.f32.gmra.mxu1 %vm85_vm1, %v166_v9  ;;  %v2687_v25 = vld [vmem:[%s3142_s2 + $0x20] sm:$0xff]  ;;  %v70_v45 = vld [vmem:[%s3145_s3 + $0x30] sm:$0xff]  ;;  %v69_v46 = vld [vmem:[%s3145_s3 + $0x28] sm:$0xff] }
   0xa   :  { %2301 = vmatmul.mubr.msk.f32.vlgmr.msra.gmra.mxu0 %vm85_vm1, %v55_v3  ;;  %2311 = vmatprep.mubr.msk.f32.mxu1 %vm85_vm1, %v167_v10  ;;  %v2757_v38 = vld [vmem:[%s3144_s8] sm:$0xff]  ;;  %v71_v47 = vld [vmem:[%s3145_s3 + $0x38] sm:$0xff] }
   0xb   :  { %2319 = vmatprep.mubr.msk.f32.mxu0 %vm304_vm3, %v2648_v14  ;;  %813 = vperm.xlu1 %2486, %v65_v40   ;;  %v64_v41 = vld [vmem:[%s3145_s3] sm:$0xff] }
   0xc   :  { %808 = vperm.xlu0 %2485, %v64_v41   ;;  %v68_v43 = vld [vmem:[%s3145_s3 + $0x20] sm:$0xff] }
   0xd   :  { %2312 = vmatmul.mubr.msk.f32.gmra.mxu1 %vm85_vm1, %v168_v11  ;;  %v2130_v56 = vld [vmem:[%s3146_s7] ss:$0 sm:$0xff] }
   0xe   :  { %2314 = vmatprep.mubr.msk.f32.mxu1 %vm85_vm1, %v169_v12 }
   0xf   :  { %818 = vperm.xlu1 %2486, %v66_v42  }
  0x10   :  { %828 = vperm.xlu0 %2485, %v68_v43  }
  0x11   :  { %2315 = vmatmul.mubr.msk.f32.gmra.mxu1 %vm85_vm1, %v170_v13 }
  0x12   :  { %2333 = vmatprep.mubr.msk.f32.mxu1 %vm2501_vm2, %v3154_v0 }
  0x13   :  { %823 = vperm.xlu1 %2486, %v67_v44  }
  0x14   :  { %838 = vperm.xlu0 %2485, %v70_v45  }
  0x15   :  { %2334 = vmatmul.mubr.msk.f32.vlgmr.msra.gmra.mxu1 %vm85_vm1, %v55_v3 }
  0x16   :  { %2351 = vmatpush3.msra.mxu1 %v2750_v37 }
  0x17   :  { %2352 = vmatprep.subr.mxu1 %v2757_v38  ;;  %833 = vperm.xlu1 %2486, %v69_v46  }
  0x18   :  { %2353 = vmatpush3.msra.mxu1 %v2757_v38 }
  0x19   :  { %2377 = vmatprep.subr.mxu1 %v3154_v0 }
  0x1b   :  { %843 = vperm.xlu1 %2486, %v71_v47   ;;  %v2834_v47 = vld [vmem:[%s3147_s12 + $0x18] sm:$0xff] }
  0x7e   :  { %v2657_v16 = vpop.permute.xlu0 %531 }
  0x7f   :  { %v540_v17 = vmul.f32 %v2655_v15, %v2657_v16 }
  0xc5   :  { %v2671_v21 = vpop.f32.mrf.mxu1 }
  0xc7   :  { %v2675_v23 = vpop.f32.mrf.mxu1 }
  0xc9   :  { %v2690_v26 = vpop.f32.mrf.mxu1 }
  0xca   :  { %v159_v18 = vpop.f32.mrf.mxu0 }
  0xcb   :  { %2317 = vmatprep.subr.mxu0 %v159_v18  ;;  %v2694_v27 = vpop.f32.mrf.mxu1 }
  0xcc   :  { %v2302_v22 = vpop.f32.mrf.mxu0  ;;  %2318 = vmatpush3.msra.mxu0 %v159_v18 }
  0xcd   :  { %2320 = vmatmul.mubr.msk.f32.vlgmr.msra.gmra.mxu0 %vm304_vm3, %v2664_v19  ;;  %2336 = vmatprep.subr.mxu0 %v540_v17  ;;  %v2708_v30 = vpop.f32.mrf.mxu1 }
  0xce   :  { %2337 = vmatpush3.msra.mxu0 %v540_v17  ;;  %2322 = vmatprep.mubr.msk.f32.mxu0 %vm304_vm3, %v2669_v20 }
  0xcf   :  { %2366 = vmatprep.subr.mxu0 %v3154_v0  ;;  %v2712_v31 = vpop.f32.mrf.mxu1 }
  0xd1   :  { %2323 = vmatmul.mubr.msk.f32.gmra.mxu0 %vm304_vm3, %v2682_v24  ;;  %v2721_v33 = vpop.f32.mrf.mxu1 }
  0xd2   :  { %2325 = vmatprep.mubr.msk.f32.mxu0 %vm304_vm3, %v2687_v25 }
  0xd3   :  { %v2725_v34 = vpop.f32.mrf.mxu1 }
  0xd5   :  { %2326 = vmatmul.mubr.msk.f32.gmra.mxu0 %vm304_vm3, %v2701_v28  ;;  %v2729_v35 = vpop.f32.mrf.mxu1 }
  0xd6   :  { %2328 = vmatprep.mubr.msk.f32.mxu0 %vm304_vm3, %v2706_v29 }
  0xd7   :  { %v2335_v36 = vpop.f32.mrf.mxu1 }
  0xd9   :  { %2329 = vmatmul.mubr.msk.f32.gmra.mxu0 %vm304_vm3, %v2719_v32 }
  0xda   :  { %2338 = vmatprep.mubr.msk.f32.mxu0 %vm304_vm3, %v2648_v14 }
  0xdd   :  { %2339 = vmatmul.mubr.msk.f32.vlgmr.msra.gmra.mxu0 %vm304_vm3, %v2664_v19 }
  0xde   :  { %2341 = vmatprep.mubr.msk.f32.mxu0 %vm304_vm3, %v2669_v20  ;;  %2367 = vmatpush3.msra.mxu0 %v2834_v47 }
  0xdf   :  { %2368 = vmatprep.subr.mxu0 %v3154_v0 }
  0xe1   :  { %2342 = vmatmul.mubr.msk.f32.gmra.mxu0 %vm304_vm3, %v2682_v24 }
  0xe2   :  { %2344 = vmatprep.mubr.msk.f32.mxu0 %vm304_vm3, %v2687_v25 }
  0xe5   :  { %2345 = vmatmul.mubr.msk.f32.gmra.mxu0 %vm304_vm3, %v2701_v28 }
  0xe6   :  { %2347 = vmatprep.mubr.msk.f32.mxu0 %vm304_vm3, %v2706_v29 }
  0xe9   :  { %2348 = vmatmul.mubr.msk.f32.gmra.mxu0 %vm304_vm3, %v2719_v32 }
  0xea   :  { %2374 = vmatprep.mubr.msk.f32.mxu0 %vm2501_vm2, %v3154_v0 }
 0x18d   :  { %v2321_v48 = vpop.f32.mrf.mxu0 }
 0x18e   :  { %v401_v54 = vadd.f32 %v2321_v48, %v2671_v21  ;;  %v2841_v48 = vld [vmem:[%s3147_s12 + $0x10] sm:$0xff] }
 0x18f   :  { %v395_v49 = vpop.f32.mrf.mxu0  ;;  %2369 = vmatpush3.msra.mxu0 %v2841_v48 }
 0x190   :  { %v396_v57 = vadd.f32 %v395_v49, %v2675_v23  ;;  %v2791_v59 = vadd.f32 %v2130_v56, %v401_v54  ;;  %2370 = vmatprep.subr.mxu0 %v3154_v0  ;;  %v2848_v49 = vld [vmem:[%s3147_s12 + $0x8] sm:$0xff]  ;;  %v2872_v54 = vld [vmem:[%s3149_s9] ss:$0 sm:$0xff] }
 0x191   :  { %v2324_v50 = vpop.f32.mrf.mxu0  ;;  %2371 = vmatpush3.msra.mxu0 %v2848_v49 }
 0x192   :  { %v411_v60 = vadd.f32 %v2324_v50, %v2690_v26  ;;  %v2794_v62 = vadd.f32 %v2130_v56, %v396_v57  ;;  %v2853_v50 = vld [vmem:[%s3147_s12] sm:$0xff]  ;;  %2372 = vmatprep.subr.mxu0 %v3154_v0 }
 0x193   :  { %v405_v51 = vpop.f32.mrf.mxu0  ;;  %2373 = vmatpush3.msra.mxu0 %v2853_v50 }
 0x194   :  { %v406_v63 = vadd.f32 %v405_v51, %v2694_v27  ;;  %v2799_v4 = vadd.f32 %v2130_v56, %v411_v60  ;;  %v2861_v51 = vld [vmem:[%s3148_s14 + $0x8] sm:$0xff] }
 0x195   :  { %v2327_v52 = vpop.f32.mrf.mxu0 }
 0x196   :  { %v421_v5 = vadd.f32 %v2327_v52, %v2708_v30  ;;  %v2802_v7 = vadd.f32 %v2130_v56, %v406_v63  ;;  %v2865_v52 = vpop.permute.xlu1 %813 }
 0x197   :  { %v415_v53 = vpop.f32.mrf.mxu0  ;;  %3166 = vst [vmem:[#allocation3_spill] sm:$0xff] %v2865_v52 }
 0x198   :  { %v416_v8 = vadd.f32 %v415_v53, %v2712_v31  ;;  %v2808_v17 = vadd.f32 %v2130_v56, %v421_v5  ;;  %v2880_v5 = vpop.permute.xlu0 %808 }
 0x199   :  { %v2330_v55 = vpop.f32.mrf.mxu0  ;;  %3169 = vst [vmem:[#allocation6_spill] sm:$0xff] %v2880_v5 }
 0x19a   :  { %v431_v18 = vadd.f32 %v2330_v55, %v2721_v33  ;;  %v2812_v22 = vadd.f32 %v2130_v56, %v416_v8  ;;  %v2867_v53 = vpop.permute.xlu1 %818 }
 0x19b   :  { %v425_v58 = vpop.f32.mrf.mxu0  ;;  %3167 = vst [vmem:[#allocation4_spill] sm:$0xff] %v2867_v53 }
 0x19c   :  { %v426_v23 = vadd.f32 %v425_v58, %v2725_v34  ;;  %v2818_v39 = vadd.f32 %v2130_v56, %v431_v18 }
 0x19d   :  { %v2340_v61 = vpop.f32.mrf.mxu0 }
 0x19e   :  { %v647_v1 = vadd.f32 %v2340_v61, %v2791_v59  ;;  %v2821_v33 = vadd.f32 %v2130_v56, %v426_v23  ;;  %v2876_v61 = vpop.permute.xlu1 %823 }
 0x19f   :  { %v607_v2 = vpop.f32.mrf.mxu0  ;;  %3168 = vst [vmem:[#allocation5_spill] sm:$0xff] %v2876_v61 }
 0x1a0   :  { %v646_v3 = vadd.f32 %v607_v2, %v2794_v62  ;;  %v655_v10 = vmax.f32 %v647_v1, 0.0 }
 0x1a1   :  { %v2343_v6 = vpop.f32.mrf.mxu0 }
 0x1a2   :  { %v654_v9 = vmax.f32 %v646_v3, 0.0  ;;  %v649_v11 = vadd.f32 %v2343_v6, %v2799_v4 }
 0x1a3   :  { %v617_v12 = vpop.f32.mrf.mxu0 }
 0x1a4   :  { %v648_v13 = vadd.f32 %v617_v12, %v2802_v7  ;;  %2354 = vmatprep.mubr.msk.f32.mxu1 %vm668_vm4, %v654_v9  ;;  %v657_v27 = vmax.f32 %v649_v11, 0.0 }
 0x1a5   :  { %v2346_v21 = vpop.f32.mrf.mxu0  ;;  %2355 = vmatmul.mubr.msk.f32.vlgmr.msra.gmra.mxu1 %vm668_vm4, %v655_v10 }
 0x1a6   :  { %v656_v26 = vmax.f32 %v648_v13, 0.0  ;;  %v651_v30 = vadd.f32 %v2346_v21, %v2808_v17  ;;  %2378 = vmatpush3.msra.mxu1 %v2861_v51 }
 0x1a7   :  { %v627_v31 = vpop.f32.mrf.mxu0  ;;  %2379 = vmatprep.subr.mxu1 %v3154_v0 }
 0x1a8   :  { %v650_v36 = vadd.f32 %v627_v31, %v2812_v22  ;;  %2357 = vmatprep.mubr.msk.f32.mxu1 %vm668_vm4, %v656_v26  ;;  %v659_v42 = vmax.f32 %v651_v30, 0.0 }
 0x1a9   :  { %v2349_v40 = vpop.f32.mrf.mxu0  ;;  %2358 = vmatmul.mubr.msk.f32.gmra.mxu1 %vm668_vm4, %v657_v27  ;;  %v2888_v27 = vpop.permute.xlu1 %833 }
 0x1aa   :  { %v658_v41 = vmax.f32 %v650_v36, 0.0  ;;  %v653_v34 = vadd.f32 %v2349_v40, %v2818_v39  ;;  %3170 = vst [vmem:[#allocation7_spill] sm:$0xff] %v2888_v27 }
 0x1ab   :  { %v637_v43 = vpop.f32.mrf.mxu0 }
 0x1ac   :  { %v652_v44 = vadd.f32 %v637_v43, %v2821_v33  ;;  %2360 = vmatprep.mubr.msk.f32.mxu1 %vm668_vm4, %v658_v41  ;;  %v661_v46 = vmax.f32 %v653_v34, 0.0 }
 0x1ad   :  { %2361 = vmatmul.mubr.msk.f32.gmra.mxu1 %vm668_vm4, %v659_v42 }
 0x1ae   :  { %v660_v45 = vmax.f32 %v652_v44, 0.0 }
 0x1b0   :  { %2363 = vmatprep.mubr.msk.f32.mxu1 %vm668_vm4, %v660_v45 }
 0x1b1   :  { %2364 = vmatmul.mubr.msk.f32.gmra.mxu1 %vm668_vm4, %v661_v46  ;;  %v2893_v46 = vpop.permute.xlu0 %828 }
 0x1b2   :  { %2381 = vmatprep.mubr.msk.f32.mxu1 %vm2501_vm2, %v3154_v0  ;;  %3171 = vst [vmem:[#allocation8_spill] sm:$0xff] %v2893_v46 }
 0x265   :  { %v2356_v55 = vpop.f32.mrf.mxu1 }
 0x266   :  { %v765_v56 = vadd.f32 %v2356_v55, %v2872_v54 }
 0x267   :  { %v759_v57 = vpop.f32.mrf.mxu1 }
 0x268   :  { %v799_v58 = vmax.f32 %v765_v56, 0.0  ;;  %v760_v60 = vadd.f32 %v2872_v54, %v759_v57 }
 0x269   :  { %v2359_v63 = vpop.f32.mrf.mxu1 }
 0x26a   :  { %v847_v1 = vmul.f32 %v2865_v52, %v799_v58  ;;  %v798_v2 = vmax.f32 %v760_v60, 0.0  ;;  %v775_v3 = vadd.f32 %v2359_v63, %v2872_v54 }
 0x26b   :  { %v769_v6 = vpop.f32.mrf.mxu1 }
 0x26c   :  { %v862_v8 = vsel %vm854_vm5, %v847_v1, -inf  ;;  %v846_v9 = vmul.f32 %v2880_v5, %v798_v2  ;;  %v801_v10 = vmax.f32 %v775_v3, 0.0  ;;  %v770_v11 = vadd.f32 %v2872_v54, %v769_v6 }
 0x26d   :  { %v863_v12 = vrot.slane %v862_v8, 4  ;;  %v2362_v13 = vpop.f32.mrf.mxu1 }
 0x26e   :  { %v855_v18 = vsel %vm854_vm5, %v846_v9, -inf  ;;  %v849_v21 = vmul.f32 %v2876_v61, %v801_v10  ;;  %v800_v23 = vmax.f32 %v770_v11, 0.0  ;;  %v785_v26 = vadd.f32 %v2362_v13, %v2872_v54  ;;  %v2901_v13 = vpop.permute.xlu1 %843 }
 0x26f   :  { %v864_v30 = vmax.f32 %v862_v8, %v863_v12  ;;  %v856_v31 = vrot.slane %v855_v18, 4  ;;  %v779_v36 = vpop.f32.mrf.mxu1  ;;  %3172 = vst [vmem:[#allocation9_spill] sm:$0xff] %v2901_v13 }
 0x270   :  { %v876_v40 = vsel %vm854_vm5, %v849_v21, -inf  ;;  %v848_v41 = vmul.f32 %v2867_v53, %v800_v23  ;;  %v803_v42 = vmax.f32 %v785_v26, 0.0  ;;  %v780_v34 = vadd.f32 %v2872_v54, %v779_v36 }
 0x271   :  { %v865_v43 = vrot.slane %v864_v30, 2  ;;  %v857_v44 = vmax.f32 %v855_v18, %v856_v31  ;;  %v877_v45 = vrot.slane %v876_v40, 4  ;;  %v2365_v55 = vpop.f32.mrf.mxu1 }
 0x272   :  { %v869_v56 = vsel %vm854_vm5, %v848_v41, -inf  ;;  %v851_v57 = vmul.f32 %v2888_v27, %v803_v42  ;;  %v802_v58 = vmax.f32 %v780_v34, 0.0  ;;  %v795_v60 = vadd.f32 %v2365_v55, %v2872_v54  ;;  %v2905_v42 = vpop.permute.xlu0 %838 }
 0x273   :  { %v866_v63 = vmax.f32 %v864_v30, %v865_v43  ;;  %v858_v1 = vrot.slane %v857_v44, 2  ;;  %v878_v2 = vmax.f32 %v876_v40, %v877_v45  ;;  %v870_v3 = vrot.slane %v869_v56, 4  ;;  %v789_v6 = vpop.f32.mrf.mxu1 }
 0x274   :  { %v890_v8 = vsel %vm854_vm5, %v851_v57, -inf  ;;  %v850_v9 = vmul.f32 %v2893_v46, %v802_v58  ;;  %v805_v10 = vmax.f32 %v795_v60, 0.0  ;;  %v790_v11 = vadd.f32 %v2872_v54, %v789_v6 }
 0x275   :  { %v859_v12 = vmax.f32 %v857_v44, %v858_v1  ;;  %v879_v18 = vrot.slane %v878_v2, 2  ;;  %v871_v21 = vmax.f32 %v869_v56, %v870_v3  ;;  %v891_v23 = vrot.slane %v890_v8, 4 }
 0x276   :  { %v883_v26 = vsel %vm854_vm5, %v850_v9, -inf  ;;  %v853_v30 = vmul.f32 %v2901_v13, %v805_v10  ;;  %v804_v31 = vmax.f32 %v790_v11, 0.0  ;;  %v867_v36 = vrot.slane %v866_v63, 1 }
 0x277   :  { %v860_v40 = vrot.slane %v859_v12, 1  ;;  %v872_v41 = vrot.slane %v871_v21, 2  ;;  %v892_v34 = vmax.f32 %v890_v8, %v891_v23  ;;  %v884_v43 = vrot.slane %v883_v26, 4 }
 0x278   :  { %v904_v45 = vsel %vm854_vm5, %v853_v30, -inf  ;;  %v852_v44 = vmul.f32 %v2905_v42, %v804_v31  ;;  %v880_v55 = vmax.f32 %v878_v2, %v879_v18  ;;  %v868_v10 = vmax.f32 %v866_v63, %v867_v36 }
 0x279   :  { %v873_v57 = vmax.f32 %v871_v21, %v872_v41  ;;  %v905_v56 = vrot.slane %v904_v45, 4  ;;  %v893_v58 = vrot.slane %v892_v34, 2  ;;  %v885_v60 = vmax.f32 %v883_v26, %v884_v43 }
 0x27a   :  { %v897_v1 = vsel %vm854_vm5, %v852_v44, -inf  ;;  %v861_v3 = vmax.f32 %v859_v12, %v860_v40  ;;  %v881_v23 = vrot.slane %v880_v55, 1 }
 0x27b   :  { %v874_v6 = vrot.slane %v873_v57, 1  ;;  %v906_v9 = vmax.f32 %v904_v45, %v905_v56  ;;  %v886_v11 = vrot.slane %v885_v60, 2  ;;  %v898_v8 = vrot.slane %v897_v1, 4 }
 0x27c   :  { %v894_v30 = vmax.f32 %v892_v34, %v893_v58  ;;  %v928_v18 = vsel %vm927_vm6, %v868_v10, %v861_v3  ;;  %v882_v40 = vmax.f32 %v880_v55, %v881_v23  ;;  %v21_v3 = vstv %s3150_s15 }
 0x27d   :  { %v875_v0 = vmax.f32 %v873_v57, %v874_v6  ;;  %v907_v13 = vrot.slane %v906_v9, 2  ;;  %v887_v31 = vmax.f32 %v885_v60, %v886_v11  ;;  %v899_v2 = vmax.f32 %v897_v1, %v898_v8  ;;  %v2923_v1 = vld [vmem:[%s3148_s14] sm:$0xff]  ;;  %22 = vst [vmem:[#allocation2] sm:$0x1] %v21_v3 }
 0x27e   :  { %v895_v43 = vrot.slane %v894_v30, 1  ;;  %2380 = vmatpush3.msra.mxu1 %v2923_v1  ;;  %v2131_v6 = vld [vmem:[%s3151_s13] ss:$0 sm:$0xff] }
 0x27f   :  { %v908_v21 = vmax.f32 %v906_v9, %v907_v13  ;;  %v930_v26 = vsel %vm929_vm7, %v875_v0, %v928_v18  ;;  %v888_v41 = vrot.slane %v887_v31, 1  ;;  %v900_v12 = vrot.slane %v899_v2, 2  ;;  %2398 = vmatprep.subr.mxu1 %v2750_v37  ;;  %v2936_v9 = vld [vmem:[%s3152_s11] ss:$0 sm:$0xff] }
 0x280   :  { %v932_v45 = vsel %vm931_vm8, %v882_v40, %v930_v26  ;;  %v896_v56 = vmax.f32 %v894_v30, %v895_v43  ;;  %v2939_v10 = vadd.f32 %v2131_v6, %v2729_v35  ;;  %v917_v11 = vmul.f32 %v2936_v9, %v2657_v16 }
 0x281   :  { %v889_v63 = vmax.f32 %v887_v31, %v888_v41  ;;  %v901_v36 = vmax.f32 %v899_v2, %v900_v12  ;;  %v909_v44 = vrot.slane %v908_v21, 1  ;;  %v3173_v18 = vmov 0.0  }
 0x282   :  { %v918_v8 = vadd.f32 %v917_v11, %v2939_v10 }
 0x283   :  { %v934_v34 = vsel %vm933_vm9, %v889_v63, %v932_v45  ;;  %v902_v57 = vrot.slane %v901_v36, 1  ;;  %v910_v0 = vmax.f32 %v908_v21, %v909_v44 }
 0x284   :  { %v936_v58 = vsel %vm935_vm10, %v896_v56, %v934_v34  ;;  %v2949_v35 = vld [vmem:[#allocation2] ss:$0 sm:$0xff] }
 0x285   :  { %v903_v13 = vmax.f32 %v901_v36, %v902_v57 }
 0x287   :  { %v938_v55 = vsel %vm937_vm11, %v903_v13, %v936_v58 }
 0x288   :  { %v940_v60 = vsel %vm939_vm12, %v910_v0, %v938_v55 }
 0x289   :  { %2375 = vmatmul.mubr.msk.f32.vlgmr.msra.gmra.mxu0 %vm854_vm5, %v940_v60 }
 0x28a   :  { %2386 = vmatprep.mubr.msk.f32.mxu0 %vm304_vm3, %v2648_v14 }
 0x349   :  { %v1009_v23 = vpop.f32.mrf.mxu0 }
 0x34a   :  { %v1013_v30 = vadd.f32 %v1009_v23, %v918_v8 }
 0x34b   :  { %v2376_v31 = vpop.f32.mrf.mxu0 }
 0x34c   :  { %v1014_v2 = vmax.f32 %v1013_v30, 0.0 }
 0x34e   :  { %2382 = vmatmul.mubr.msk.f32.vlgmr.msra.gmra.mxu1 %vm668_vm4, %v1014_v2 }
 0x34f   :  { %2399 = vmatpush3.msra.mxu1 %v2750_v37 }
 0x350   :  { %2400 = vmatprep.subr.mxu1 %v2757_v38 }
 0x351   :  { %2401 = vmatpush3.msra.mxu1 %v2757_v38 }
 0x352   :  { %2425 = vmatprep.subr.mxu1 %v3173_v18 }
 0x40e   :  { %v1090_v21 = vpop.f32.mrf.mxu1 }
 0x40f   :  { %v1091_v16 = vadd.f32 %v2949_v35, %v1090_v21 }
 0x410   :  { %v2383_v26 = vpop.f32.mrf.mxu1 }
 0x411   :  { %v2156_v41 = vmul.f32 -1.442695, %v1091_v16 }
 0x413   :  { %2487 = vpow2.f32 %v2156_v41 }
 0x420   :  { %v2488_v12 = vpop.eup %2487 }
 0x421   :  { %v1097_v40 = vadd.f32 1.0, %v2488_v12 }
 0x423   :  { %2489 = vrcp.f32 %v1097_v40 }
 0x430   :  { %v2490_v43 = vpop.eup %2489 }
 0x431   :  { %1102 = vperm.xlu0 %2485, %v2490_v43  }
 0x4ac   :  { %v2952_v63 = vpop.permute.xlu0 %1102 }
 0x4ad   :  { %v1105_v36 = vmul.f32 %v2655_v15, %v2952_v63 }
 0x4af   :  { %2384 = vmatprep.subr.mxu0 %v1105_v36 }
 0x4b0   :  { %2385 = vmatpush3.msra.mxu0 %v1105_v36 }
 0x4b1   :  { %2387 = vmatmul.mubr.msk.f32.vlgmr.msra.gmra.mxu0 %vm304_vm3, %v2664_v19  ;;  %2414 = vmatprep.subr.mxu0 %v3173_v18 }
 0x4b2   :  { %2389 = vmatprep.mubr.msk.f32.mxu0 %vm304_vm3, %v2669_v20  ;;  %2415 = vmatpush3.msra.mxu0 %v2834_v47 }
 0x4b3   :  { %2416 = vmatprep.subr.mxu0 %v3173_v18 }
 0x4b4   :  { %2417 = vmatpush3.msra.mxu0 %v2841_v48 }
 0x4b5   :  { %2390 = vmatmul.mubr.msk.f32.gmra.mxu0 %vm304_vm3, %v2682_v24  ;;  %2418 = vmatprep.subr.mxu0 %v3173_v18 }
 0x4b6   :  { %2392 = vmatprep.mubr.msk.f32.mxu0 %vm304_vm3, %v2687_v25  ;;  %2419 = vmatpush3.msra.mxu0 %v2848_v49 }
 0x4b7   :  { %2420 = vmatprep.subr.mxu0 %v3173_v18 }
 0x4b8   :  { %2421 = vmatpush3.msra.mxu0 %v2853_v50 }
 0x4b9   :  { %2393 = vmatmul.mubr.msk.f32.gmra.mxu0 %vm304_vm3, %v2701_v28 }
 0x4ba   :  { %2395 = vmatprep.mubr.msk.f32.mxu0 %vm304_vm3, %v2706_v29 }
 0x4bd   :  { %2396 = vmatmul.mubr.msk.f32.gmra.mxu0 %vm304_vm3, %v2719_v32 }
 0x4be   :  { %2422 = vmatprep.mubr.msk.f32.mxu0 %vm2501_vm2, %v3173_v18 }
 0x571   :  { %v2388_v45 = vpop.f32.mrf.mxu0 }
 0x572   :  { %v1212_v44 = vadd.f32 %v2388_v45, %v2791_v59 }
 0x573   :  { %v1172_v34 = vpop.f32.mrf.mxu0 }
 0x574   :  { %v1211_v57 = vadd.f32 %v1172_v34, %v2794_v62  ;;  %v1220_v0 = vmax.f32 %v1212_v44, 0.0 }
 0x575   :  { %v2391_v56 = vpop.f32.mrf.mxu0 }
 0x576   :  { %v1219_v13 = vmax.f32 %v1211_v57, 0.0  ;;  %v1214_v58 = vadd.f32 %v2391_v56, %v2799_v4 }
 0x577   :  { %v1182_v55 = vpop.f32.mrf.mxu0 }
 0x578   :  { %v1213_v60 = vadd.f32 %v1182_v55, %v2802_v7  ;;  %2402 = vmatprep.mubr.msk.f32.mxu1 %vm668_vm4, %v1219_v13  ;;  %v1222_v11 = vmax.f32 %v1214_v58, 0.0 }
 0x579   :  { %v2394_v3 = vpop.f32.mrf.mxu0  ;;  %2403 = vmatmul.mubr.msk.f32.vlgmr.msra.gmra.mxu1 %vm668_vm4, %v1220_v0 }
 0x57a   :  { %v1221_v6 = vmax.f32 %v1213_v60, 0.0  ;;  %2426 = vmatpush3.msra.mxu1 %v2861_v51  ;;  %v1216_v8 = vadd.f32 %v2394_v3, %v2808_v17 }
 0x57b   :  { %v1192_v23 = vpop.f32.mrf.mxu0  ;;  %2427 = vmatprep.subr.mxu1 %v3173_v18 }
 0x57c   :  { %v1215_v30 = vadd.f32 %v1192_v23, %v2812_v22  ;;  %2405 = vmatprep.mubr.msk.f32.mxu1 %vm668_vm4, %v1221_v6  ;;  %2428 = vmatpush3.msra.mxu1 %v2923_v1  ;;  %v1224_v21 = vmax.f32 %v1216_v8, 0.0 }
 0x57d   :  { %v2397_v31 = vpop.f32.mrf.mxu0  ;;  %2406 = vmatmul.mubr.msk.f32.gmra.mxu1 %vm668_vm4, %v1222_v11  ;;  %2446 = vmatprep.subr.mxu1 %v2750_v37 }
 0x57e   :  { %v1223_v2 = vmax.f32 %v1215_v30, 0.0  ;;  %v1218_v16 = vadd.f32 %v2397_v31, %v2818_v39 }
 0x57f   :  { %v1202_v26 = vpop.f32.mrf.mxu0 }
 0x580   :  { %v1217_v41 = vadd.f32 %v1202_v26, %v2821_v33  ;;  %2408 = vmatprep.mubr.msk.f32.mxu1 %vm668_vm4, %v1223_v2  ;;  %v1226_v40 = vmax.f32 %v1218_v16, 0.0 }
 0x581   :  { %2409 = vmatmul.mubr.msk.f32.gmra.mxu1 %vm668_vm4, %v1224_v21 }
 0x582   :  { %v1225_v12 = vmax.f32 %v1217_v41, 0.0 }
 0x584   :  { %2411 = vmatprep.mubr.msk.f32.mxu1 %vm668_vm4, %v1225_v12 }
 0x585   :  { %2412 = vmatmul.mubr.msk.f32.gmra.mxu1 %vm668_vm4, %v1226_v40 }
 0x586   :  { %2429 = vmatprep.mubr.msk.f32.mxu1 %vm2501_vm2, %v3173_v18 }
 0x639   :  { %v2404_v43 = vpop.f32.mrf.mxu1 }
 0x63a   :  { %v1323_v36 = vadd.f32 %v2404_v43, %v2872_v54 }
 0x63b   :  { %v1317_v45 = vpop.f32.mrf.mxu1 }
 0x63c   :  { %v1357_v44 = vmax.f32 %v1323_v36, 0.0  ;;  %v1318_v34 = vadd.f32 %v2872_v54, %v1317_v45 }
 0x63d   :  { %v2407_v57 = vpop.f32.mrf.mxu1 }
 0x63e   :  { %v1365_v56 = vmul.f32 %v1357_v44, %v2865_v52  ;;  %v1356_v13 = vmax.f32 %v1318_v34, 0.0  ;;  %v1333_v0 = vadd.f32 %v2407_v57, %v2872_v54 }
 0x63f   :  { %v1327_v58 = vpop.f32.mrf.mxu1 }
 0x640   :  { %v1379_v55 = vsel %vm854_vm5, %v1365_v56, -inf  ;;  %v1364_v60 = vmul.f32 %v1356_v13, %v2880_v5  ;;  %v1359_v3 = vmax.f32 %v1333_v0, 0.0  ;;  %v1328_v6 = vadd.f32 %v2872_v54, %v1327_v58 }
 0x641   :  { %v1380_v11 = vrot.slane %v1379_v55, 4  ;;  %v2410_v8 = vpop.f32.mrf.mxu1 }
 0x642   :  { %v1372_v23 = vsel %vm854_vm5, %v1364_v60, -inf  ;;  %v1367_v30 = vmul.f32 %v1359_v3, %v2876_v61  ;;  %v1358_v31 = vmax.f32 %v1328_v6, 0.0  ;;  %v1343_v2 = vadd.f32 %v2410_v8, %v2872_v54 }
 0x643   :  { %v1381_v21 = vmax.f32 %v1379_v55, %v1380_v11  ;;  %v1373_v16 = vrot.slane %v1372_v23, 4  ;;  %v1337_v26 = vpop.f32.mrf.mxu1 }
 0x644   :  { %v1393_v41 = vsel %vm854_vm5, %v1367_v30, -inf  ;;  %v1366_v12 = vmul.f32 %v1358_v31, %v2867_v53  ;;  %v1361_v40 = vmax.f32 %v1343_v2, 0.0  ;;  %v1338_v43 = vadd.f32 %v2872_v54, %v1337_v26 }
 0x645   :  { %v1382_v36 = vrot.slane %v1381_v21, 2  ;;  %v1374_v45 = vmax.f32 %v1372_v23, %v1373_v16  ;;  %v1394_v44 = vrot.slane %v1393_v41, 4  ;;  %v2413_v34 = vpop.f32.mrf.mxu1 }
 0x646   :  { %v1386_v57 = vsel %vm854_vm5, %v1366_v12, -inf  ;;  %v1369_v56 = vmul.f32 %v1361_v40, %v2888_v27  ;;  %v1360_v13 = vmax.f32 %v1338_v43, 0.0  ;;  %v1353_v0 = vadd.f32 %v2413_v34, %v2872_v54  ;;  %v3174_v40 = vld [vmem:[#allocation9_spill] sm:$0xff] }
 0x647   :  { %v1383_v58 = vmax.f32 %v1381_v21, %v1382_v36  ;;  %v1375_v55 = vrot.slane %v1374_v45, 2  ;;  %v1395_v60 = vmax.f32 %v1393_v41, %v1394_v44  ;;  %v1387_v3 = vrot.slane %v1386_v57, 4  ;;  %v1347_v6 = vpop.f32.mrf.mxu1 }
 0x648   :  { %v1407_v11 = vsel %vm854_vm5, %v1369_v56, -inf  ;;  %v1368_v8 = vmul.f32 %v1360_v13, %v2893_v46  ;;  %v1363_v30 = vmax.f32 %v1353_v0, 0.0  ;;  %v1348_v23 = vadd.f32 %v2872_v54, %v1347_v6 }
 0x649   :  { %v1376_v31 = vmax.f32 %v1374_v45, %v1375_v55  ;;  %v1396_v2 = vrot.slane %v1395_v60, 2  ;;  %v1388_v16 = vmax.f32 %v1386_v57, %v1387_v3  ;;  %v1408_v26 = vrot.slane %v1407_v11, 4 }
 0x64a   :  { %v1400_v12 = vsel %vm854_vm5, %v1368_v8, -inf  ;;  %v1371_v43 = vmul.f32 %v1363_v30, %v3174_v40  ;;  %v1362_v21 = vmax.f32 %v1348_v23, 0.0  ;;  %v1384_v36 = vrot.slane %v1383_v58, 1 }
 0x64b   :  { %v1377_v41 = vrot.slane %v1376_v31, 1  ;;  %v1389_v44 = vrot.slane %v1388_v16, 2  ;;  %v1409_v34 = vmax.f32 %v1407_v11, %v1408_v26  ;;  %v1401_v27 = vrot.slane %v1400_v12, 4 }
 0x64c   :  { %v1421_v56 = vsel %vm854_vm5, %v1371_v43, -inf  ;;  %v1370_v13 = vmul.f32 %v1362_v21, %v2905_v42  ;;  %v1397_v0 = vmax.f32 %v1395_v60, %v1396_v2  ;;  %v1385_v23 = vmax.f32 %v1383_v58, %v1384_v36 }
 0x64d   :  { %v1390_v6 = vmax.f32 %v1388_v16, %v1389_v44  ;;  %v1422_v45 = vrot.slane %v1421_v56, 4  ;;  %v1410_v55 = vrot.slane %v1409_v34, 2  ;;  %v1402_v57 = vmax.f32 %v1400_v12, %v1401_v27 }
 0x64e   :  { %v1414_v3 = vsel %vm854_vm5, %v1370_v13, -inf  ;;  %v1378_v8 = vmax.f32 %v1376_v31, %v1377_v41  ;;  %v1398_v61 = vrot.slane %v1397_v0, 1 }
 0x64f   :  { %v1391_v46 = vrot.slane %v1390_v6, 1  ;;  %v1423_v30 = vmax.f32 %v1421_v56, %v1422_v45  ;;  %v1403_v40 = vrot.slane %v1402_v57, 2  ;;  %v1415_v53 = vrot.slane %v1414_v3, 4 }
 0x650   :  { %v1411_v26 = vmax.f32 %v1409_v34, %v1410_v55  ;;  %v1438_v60 = vsel %vm927_vm6, %v1385_v23, %v1378_v8  ;;  %v1399_v21 = vmax.f32 %v1397_v0, %v1398_v61 }
 0x651   :  { %v1392_v11 = vmax.f32 %v1390_v6, %v1391_v46  ;;  %v1424_v5 = vrot.slane %v1423_v30, 2  ;;  %v1404_v43 = vmax.f32 %v1402_v57, %v1403_v40  ;;  %v1416_v52 = vmax.f32 %v1414_v3, %v1415_v53 }
 0x652   :  { %v1412_v31 = vrot.slane %v1411_v26, 1 }
 0x653   :  { %v1425_v2 = vmax.f32 %v1423_v30, %v1424_v5  ;;  %v1439_v16 = vsel %vm929_vm7, %v1392_v11, %v1438_v60  ;;  %v1405_v27 = vrot.slane %v1404_v43, 1  ;;  %v1417_v12 = vrot.slane %v1416_v52, 2 }
 0x654   :  { %v1440_v58 = vsel %vm931_vm8, %v1399_v21, %v1439_v16  ;;  %v1413_v56 = vmax.f32 %v1411_v26, %v1412_v31  ;;  %v3175_v31 = vld [vmem:[#allocation3_spill] sm:$0xff] }
 0x655   :  { %v1406_v41 = vmax.f32 %v1404_v43, %v1405_v27  ;;  %v1418_v44 = vmax.f32 %v1416_v52, %v1417_v12  ;;  %v1426_v36 = vrot.slane %v1425_v2, 1  ;;  %v1428_v52 = vmul.f32 %v2936_v9, %v2952_v63 }
 0x657   :  { %v1441_v46 = vsel %vm933_vm9, %v1406_v41, %v1440_v58  ;;  %v1419_v34 = vrot.slane %v1418_v44, 1  ;;  %v1427_v53 = vmax.f32 %v1425_v2, %v1426_v36  ;;  %v1429_v61 = vadd.f32 %v1428_v52, %v2939_v10 }
 0x658   :  { %v1442_v13 = vsel %vm935_vm10, %v1413_v56, %v1441_v46 }
 0x659   :  { %v1420_v40 = vmax.f32 %v1418_v44, %v1419_v34  ;;  %v3176_v34 = vld [vmem:[#allocation6_spill] sm:$0xff] }
 0x65b   :  { %v1443_v5 = vsel %vm937_vm11, %v1420_v40, %v1442_v13 }
 0x65c   :  { %v1444_v6 = vsel %vm939_vm12, %v1427_v53, %v1443_v5 }
 0x65d   :  { %2423 = vmatmul.mubr.msk.f32.vlgmr.msra.gmra.mxu0 %vm854_vm5, %v1444_v6  ;;  %v3177_v6 = vld [vmem:[#allocation5_spill] sm:$0xff] }
 0x65e   :  { %2434 = vmatprep.mubr.msk.f32.mxu0 %vm304_vm3, %v2648_v14 }
 0x71d   :  { %v1513_v0 = vpop.f32.mrf.mxu0 }
 0x71e   :  { %v1517_v45 = vadd.f32 %v1513_v0, %v1429_v61 }
 0x71f   :  { %v2424_v55 = vpop.f32.mrf.mxu0 }
 0x720   :  { %v1518_v57 = vmax.f32 %v1517_v45, 0.0 }
 0x722   :  { %2430 = vmatmul.mubr.msk.f32.vlgmr.msra.gmra.mxu1 %vm668_vm4, %v1518_v57 }
 0x723   :  { %2447 = vmatpush3.msra.mxu1 %v2750_v37 }
 0x724   :  { %2448 = vmatprep.subr.mxu1 %v2757_v38 }
 0x725   :  { %2449 = vmatpush3.msra.mxu1 %v2757_v38 }
 0x726   :  { %2473 = vmatprep.subr.mxu1 %v3173_v18 }
 0x7e2   :  { %v1588_v14 = vpop.f32.mrf.mxu1 }
 0x7e3   :  { %v1589_v3 = vadd.f32 %v2949_v35, %v1588_v14 }
 0x7e4   :  { %v2431_v63 = vpop.f32.mrf.mxu1 }
 0x7e5   :  { %v2175_v8 = vmul.f32 -1.442695, %v1589_v3  ;;  %v3178_v3 = vld [vmem:[#allocation4_spill] sm:$0xff] }
 0x7e7   :  { %2491 = vpow2.f32 %v2175_v8 }
 0x7f4   :  { %v2492_v30 = vpop.eup %2491 }
 0x7f5   :  { %v1595_v23 = vadd.f32 1.0, %v2492_v30 }
 0x7f7   :  { %2493 = vrcp.f32 %v1595_v23 }
 0x804   :  { %v2494_v11 = vpop.eup %2493 }
 0x805   :  { %1600 = vperm.xlu1 %2486, %v2494_v11  }
 0x880   :  { %v3045_v26 = vpop.permute.xlu1 %1600 }
 0x881   :  { %v1603_v37 = vmul.f32 %v2655_v15, %v3045_v26 }
 0x883   :  { %2432 = vmatprep.subr.mxu0 %v1603_v37 }
 0x884   :  { %2433 = vmatpush3.msra.mxu0 %v1603_v37 }
 0x885   :  { %2435 = vmatmul.mubr.msk.f32.vlgmr.msra.gmra.mxu0 %vm304_vm3, %v2664_v19  ;;  %2462 = vmatprep.subr.mxu0 %v3173_v18 }
 0x886   :  { %2437 = vmatprep.mubr.msk.f32.mxu0 %vm304_vm3, %v2669_v20  ;;  %2463 = vmatpush3.msra.mxu0 %v2834_v47 }
 0x887   :  { %2464 = vmatprep.subr.mxu0 %v3173_v18 }
 0x888   :  { %2465 = vmatpush3.msra.mxu0 %v2841_v48 }
 0x889   :  { %2438 = vmatmul.mubr.msk.f32.gmra.mxu0 %vm304_vm3, %v2682_v24  ;;  %2466 = vmatprep.subr.mxu0 %v3173_v18 }
 0x88a   :  { %2440 = vmatprep.mubr.msk.f32.mxu0 %vm304_vm3, %v2687_v25  ;;  %2467 = vmatpush3.msra.mxu0 %v2848_v49 }
 0x88b   :  { %2468 = vmatprep.subr.mxu0 %v3173_v18 }
 0x88c   :  { %2469 = vmatpush3.msra.mxu0 %v2853_v50 }
 0x88d   :  { %2441 = vmatmul.mubr.msk.f32.gmra.mxu0 %vm304_vm3, %v2701_v28 }
 0x88e   :  { %2443 = vmatprep.mubr.msk.f32.mxu0 %vm304_vm3, %v2706_v29 }
 0x891   :  { %2444 = vmatmul.mubr.msk.f32.gmra.mxu0 %vm304_vm3, %v2719_v32 }
 0x892   :  { %2470 = vmatprep.mubr.msk.f32.mxu0 %vm2501_vm2, %v3173_v18 }
 0x945   :  { %v2436_v15 = vpop.f32.mrf.mxu0 }
 0x946   :  { %v1710_v19 = vadd.f32 %v2436_v15, %v2791_v59 }
 0x947   :  { %v1670_v20 = vpop.f32.mrf.mxu0 }
 0x948   :  { %v1709_v24 = vadd.f32 %v1670_v20, %v2794_v62  ;;  %v1718_v47 = vmax.f32 %v1710_v19, 0.0  ;;  %v3179_v20 = vld [vmem:[#allocation7_spill] sm:$0xff] }
 0x949   :  { %v2439_v25 = vpop.f32.mrf.mxu0 }
 0x94a   :  { %v1717_v38 = vmax.f32 %v1709_v24, 0.0  ;;  %v1712_v28 = vadd.f32 %v2439_v25, %v2799_v4 }
 0x94b   :  { %v1680_v48 = vpop.f32.mrf.mxu0 }
 0x94c   :  { %v1711_v29 = vadd.f32 %v1680_v48, %v2802_v7  ;;  %2450 = vmatprep.mubr.msk.f32.mxu1 %vm668_vm4, %v1717_v38  ;;  %v1720_v59 = vmax.f32 %v1712_v28, 0.0 }
 0x94d   :  { %v2442_v32 = vpop.f32.mrf.mxu0  ;;  %2451 = vmatmul.mubr.msk.f32.vlgmr.msra.gmra.mxu1 %vm668_vm4, %v1718_v47 }
 0x94e   :  { %v1719_v49 = vmax.f32 %v1711_v29, 0.0  ;;  %2474 = vmatpush3.msra.mxu1 %v2861_v51  ;;  %v1714_v50 = vadd.f32 %v2442_v32, %v2808_v17 }
 0x94f   :  { %v1690_v62 = vpop.f32.mrf.mxu0  ;;  %2475 = vmatprep.subr.mxu1 %v3173_v18 }
 0x950   :  { %v1713_v43 = vadd.f32 %v1690_v62, %v2812_v22  ;;  %2453 = vmatprep.mubr.msk.f32.mxu1 %vm668_vm4, %v1719_v49  ;;  %2476 = vmatpush3.msra.mxu1 %v2923_v1  ;;  %v1722_v60 = vmax.f32 %v1714_v50, 0.0 }
 0x951   :  { %v2445_v4 = vpop.f32.mrf.mxu0  ;;  %2454 = vmatmul.mubr.msk.f32.gmra.mxu1 %vm668_vm4, %v1720_v59  ;;  %v3180_v59 = vld [vmem:[#allocation8_spill] sm:$0xff] }
 0x952   :  { %v1721_v7 = vmax.f32 %v1713_v43, 0.0  ;;  %v1716_v2 = vadd.f32 %v2445_v4, %v2818_v39 }
 0x953   :  { %v1700_v51 = vpop.f32.mrf.mxu0 }
 0x954   :  { %v1715_v16 = vadd.f32 %v1700_v51, %v2821_v33  ;;  %2456 = vmatprep.mubr.msk.f32.mxu1 %vm668_vm4, %v1721_v7  ;;  %v1724_v22 = vmax.f32 %v1716_v2, 0.0 }
 0x955   :  { %2457 = vmatmul.mubr.msk.f32.gmra.mxu1 %vm668_vm4, %v1722_v60 }
 0x956   :  { %v1723_v17 = vmax.f32 %v1715_v16, 0.0  ;;  %v3181_v16 = vld [vmem:[#allocation9_spill] sm:$0xff] }
 0x958   :  { %2459 = vmatprep.mubr.msk.f32.mxu1 %vm668_vm4, %v1723_v17 }
 0x959   :  { %2460 = vmatmul.mubr.msk.f32.gmra.mxu1 %vm668_vm4, %v1724_v22 }
 0x95a   :  { %2477 = vmatprep.mubr.msk.f32.mxu1 %vm2501_vm2, %v3173_v18 }
 0xa0d   :  { %v2452_v1 = vpop.f32.mrf.mxu1 }
 0xa0e   :  { %v1821_v27 = vadd.f32 %v2452_v1, %v2872_v54 }
 0xa0f   :  { %v1815_v39 = vpop.f32.mrf.mxu1 }
 0xa10   :  { %v1855_v12 = vmax.f32 %v1821_v27, 0.0  ;;  %v1816_v33 = vadd.f32 %v2872_v54, %v1815_v39 }
 0xa11   :  { %v2455_v21 = vpop.f32.mrf.mxu1 }
 0xa12   :  { %v1863_v41 = vmul.f32 %v1855_v12, %v3175_v31  ;;  %v1854_v44 = vmax.f32 %v1816_v33, 0.0  ;;  %v1831_v58 = vadd.f32 %v2455_v21, %v2872_v54 }
 0xa13   :  { %v1825_v36 = vpop.f32.mrf.mxu1 }
 0xa14   :  { %v1877_v46 = vsel %vm854_vm5, %v1863_v41, -inf  ;;  %v1862_v56 = vmul.f32 %v1854_v44, %v3176_v34  ;;  %v1857_v40 = vmax.f32 %v1831_v58, 0.0  ;;  %v1826_v18 = vadd.f32 %v2872_v54, %v1825_v36 }
 0xa15   :  { %v1878_v53 = vrot.slane %v1877_v46, 4  ;;  %v2458_v13 = vpop.f32.mrf.mxu1 }
 0xa16   :  { %v1870_v5 = vsel %vm854_vm5, %v1862_v56, -inf  ;;  %v1865_v52 = vmul.f32 %v1857_v40, %v3177_v6  ;;  %v1856_v61 = vmax.f32 %v1826_v18, 0.0  ;;  %v1841_v0 = vadd.f32 %v2458_v13, %v2872_v54 }
 0xa17   :  { %v1879_v45 = vmax.f32 %v1877_v46, %v1878_v53  ;;  %v1871_v55 = vrot.slane %v1870_v5, 4  ;;  %v1835_v57 = vpop.f32.mrf.mxu1 }
 0xa18   :  { %v1891_v14 = vsel %vm854_vm5, %v1865_v52, -inf  ;;  %v1864_v63 = vmul.f32 %v1856_v61, %v3178_v3  ;;  %v1859_v8 = vmax.f32 %v1841_v0, 0.0  ;;  %v1836_v30 = vadd.f32 %v2872_v54, %v1835_v57 }
 0xa19   :  { %v1880_v23 = vrot.slane %v1879_v45, 2  ;;  %v1872_v11 = vmax.f32 %v1870_v5, %v1871_v55  ;;  %v1892_v37 = vrot.slane %v1891_v14, 4  ;;  %v2461_v15 = vpop.f32.mrf.mxu1 }
 0xa1a   :  { %v1884_v19 = vsel %vm854_vm5, %v1864_v63, -inf  ;;  %v1867_v24 = vmul.f32 %v1859_v8, %v3179_v20  ;;  %v1858_v25 = vmax.f32 %v1836_v30, 0.0  ;;  %v1851_v38 = vadd.f32 %v2461_v15, %v2872_v54 }
 0xa1b   :  { %v1881_v47 = vmax.f32 %v1879_v45, %v1880_v23  ;;  %v1873_v28 = vrot.slane %v1872_v11, 2  ;;  %v1893_v48 = vmax.f32 %v1891_v14, %v1892_v37  ;;  %v1885_v29 = vrot.slane %v1884_v19, 4  ;;  %v1845_v32 = vpop.f32.mrf.mxu1 }
 0xa1c   :  { %v1905_v49 = vsel %vm854_vm5, %v1867_v24, -inf  ;;  %v1866_v50 = vmul.f32 %v1858_v25, %v3180_v59  ;;  %v1861_v62 = vmax.f32 %v1851_v38, 0.0  ;;  %v1846_v43 = vadd.f32 %v2872_v54, %v1845_v32 }
 0xa1d   :  { %v1874_v4 = vmax.f32 %v1872_v11, %v1873_v28  ;;  %v1894_v7 = vrot.slane %v1893_v48, 2  ;;  %v1886_v60 = vmax.f32 %v1884_v19, %v1885_v29  ;;  %v1906_v2 = vrot.slane %v1905_v49, 4 }
 0xa1e   :  { %v1898_v51 = vsel %vm854_vm5, %v1866_v50, -inf  ;;  %v1869_v17 = vmul.f32 %v1861_v62, %v3181_v16  ;;  %v1860_v22 = vmax.f32 %v1846_v43, 0.0  ;;  %v1882_v1 = vrot.slane %v1881_v47, 1  ;;  %v2499_v16 = vld [vmem:[%s3139_s0] sm:$0xff] }
 0xa1f   :  { %v1875_v27 = vrot.slane %v1874_v4, 1  ;;  %v1887_v39 = vrot.slane %v1886_v60, 2  ;;  %v1907_v12 = vmax.f32 %v1905_v49, %v1906_v2  ;;  %v1899_v33 = vrot.slane %v1898_v51, 4 }
 0xa20   :  { %v1919_v21 = vsel %vm854_vm5, %v1869_v17, -inf  ;;  %v1868_v31 = vmul.f32 %v1860_v22, %v2905_v42  ;;  %v1895_v41 = vmax.f32 %v1893_v48, %v1894_v7  ;;  %v1883_v18 = vmax.f32 %v1881_v47, %v1882_v1 }
 0xa21   :  { %v1888_v54 = vmax.f32 %v1886_v60, %v1887_v39  ;;  %v1920_v44 = vrot.slane %v1919_v21, 4  ;;  %v1908_v58 = vrot.slane %v1907_v12, 2  ;;  %v1900_v36 = vmax.f32 %v1898_v51, %v1899_v33 }
 0xa22   :  { %v1912_v46 = vsel %vm854_vm5, %v1868_v31, -inf  ;;  %v1876_v34 = vmax.f32 %v1874_v4, %v1875_v27  ;;  %v1896_v5 = vrot.slane %v1895_v41, 1  ;;  %v1926_v48 = vmul.f32 %v2936_v9, %v3045_v26 }
 0xa23   :  { %v1889_v56 = vrot.slane %v1888_v54, 1  ;;  %v1921_v40 = vmax.f32 %v1919_v21, %v1920_v44  ;;  %v1901_v53 = vrot.slane %v1900_v36, 2  ;;  %v1913_v13 = vrot.slane %v1912_v46, 4 }
 0xa24   :  { %v1909_v52 = vmax.f32 %v1907_v12, %v1908_v58  ;;  %v1936_v42 = vsel %vm927_vm6, %v1883_v18, %v1876_v34  ;;  %v1897_v63 = vmax.f32 %v1895_v41, %v1896_v5  ;;  %v1927_v29 = vadd.f32 %v1926_v48, %v2939_v10 }
 0xa25   :  { %v1890_v6 = vmax.f32 %v1888_v54, %v1889_v56  ;;  %v1922_v61 = vrot.slane %v1921_v40, 2  ;;  %v1902_v0 = vmax.f32 %v1900_v36, %v1901_v53  ;;  %v1914_v45 = vmax.f32 %v1912_v46, %v1913_v13 }
 0xa26   :  { %v1910_v8 = vrot.slane %v1909_v52, 1  ;;  %v2096_v9 = vlaneseq }
 0xa27   :  { %v1923_v55 = vmax.f32 %v1921_v40, %v1922_v61  ;;  %v1937_v57 = vsel %vm929_vm7, %v1890_v6, %v1936_v42  ;;  %v1903_v14 = vrot.slane %v1902_v0, 1  ;;  %v1915_v3 = vrot.slane %v1914_v45, 2 }
 0xa28   :  { %v1938_v11 = vsel %vm931_vm8, %v1897_v63, %v1937_v57  ;;  %v1911_v20 = vmax.f32 %v1909_v52, %v1910_v8  ;;  %v2097_v26 = vand.u32 127, %v2096_v9 }
 0xa29   :  { %v1904_v30 = vmax.f32 %v1902_v0, %v1903_v14  ;;  %v1916_v23 = vmax.f32 %v1914_v45, %v1915_v3  ;;  %v1924_v37 = vrot.slane %v1923_v55, 1 }
 0xa2a   :  { %vm2098_vm13 = vcmp.lt.s32.totalorder %v2097_v26, 2 }
 0xa2b   :  { %v1939_v15 = vsel %vm933_vm9, %v1904_v30, %v1938_v11  ;;  %v1917_v19 = vrot.slane %v1916_v23, 1  ;;  %v1925_v25 = vmax.f32 %v1923_v55, %v1924_v37 }
 0xa2c   :  { %v1940_v38 = vsel %vm935_vm10, %v1911_v20, %v1939_v15 }
 0xa2d   :  { %v1918_v24 = vmax.f32 %v1916_v23, %v1917_v19 }
 0xa2f   :  { %v1941_v47 = vsel %vm937_vm11, %v1918_v24, %v1940_v38 }
 0xa30   :  { %v1942_v28 = vsel %vm939_vm12, %v1925_v25, %v1941_v47 }
 0xa31   :  { %2471 = vmatmul.mubr.msk.f32.vlgmr.msra.gmra.mxu0 %vm854_vm5, %v1942_v28 }
 0xaf1   :  { %v2011_v32 = vpop.f32.mrf.mxu0 }
 0xaf2   :  { %v2015_v49 = vadd.f32 %v2011_v32, %v1927_v29 }
 0xaf3   :  { %v2472_v59 = vpop.f32.mrf.mxu0 }
 0xaf4   :  { %v2016_v50 = vmax.f32 %v2015_v49, 0.0 }
 0xaf6   :  { %2478 = vmatmul.mubr.msk.f32.vlgmr.msra.gmra.mxu1 %vm668_vm4, %v2016_v50 }
 0xbb6   :  { %v2086_v62 = vpop.f32.mrf.mxu1 }
 0xbb7   :  { %v2087_v43 = vadd.f32 %v2949_v35, %v2086_v62 }
 0xbb8   :  { %v2479_v4 = vpop.f32.mrf.mxu1 }
 0xbb9   :  { %v2194_v7 = vmul.f32 -1.442695, %v2087_v43 }
 0xbbb   :  { %2495 = vpow2.f32 %v2194_v7 }
 0xbc8   :  { %v2496_v60 = vpop.eup %2495 }
 0xbc9   :  { %v2093_v2 = vadd.f32 1.0, %v2496_v60 }
 0xbcb   :  { %2497 = vrcp.f32 %v2093_v2 }
 0xbd8   :  { %v2498_v51 = vpop.eup %2497 }
 0xbd9   :  { %2101 = vperm.xlu0 %2485, %v2498_v51  }
 0xc54   :  { %v2102_v10 = vpop.permute.xlu0 %2101 }
 0xc55   :  { %v2104_v17 = vsel %vm2098_vm13, %v2499_v16, %v2102_v10 }
 0xc56   :  { %2106 = vst.msk [vmem:[%s3153_s16] sm:$0xff] %vm2105_vm14, %v2104_v17 }

</bundles_post_ra>
